<compile_context>
chip_gen: v6e
topology: v6e:2x2x1
jax: 0.10.0
libtpu: 0.0.40
codegen_flags: <defaults>
</compile_context>

<pallas_src>
import jax
import jax.numpy as jnp
from jax.experimental import pallas as pl
from jax.experimental.pallas import tpu as pltpu


def _round_up(x, m):
    return ((x + m - 1) // m) * m


# --------------------------------------------------------------------------- #
# Kernels
# --------------------------------------------------------------------------- #
def _dma_gather_kernel(tok_ref, cnt_ref, slot_ref, table_hbm, prm_ref, out_ref,
                       sem):
    # tok_ref  : SMEM int32 [N_pad]       row to fetch, -1 => skip (prompt/pad)
    # cnt_ref  : SMEM int32 [num_blocks]  number of prompt rows in each block
    # slot_ref : VMEM int32 [T, 1]        prompt row index, -1 => keep gathered
    # table_hbm: HBM  [V, E_pad]          (memory_space=pl.ANY)
    # prm_ref  : VMEM [P_pad, E_pad]      prompt rows
    # out_ref  : VMEM [T, E_pad]          current output block
    # sem      : DMA semaphore (1,)
    T = out_ref.shape[0]
    base = pl.program_id(0) * T

    # Issue all row-gather DMAs of this block straight into out_ref so they
    # are in flight concurrently.  Prompt / padded rows are skipped.
    def _issue(t, carry):
        tok = tok_ref[base + t]

        @pl.when(tok >= 0)
        def _():
            pltpu.make_async_copy(table_hbm.at[pl.ds(tok, 1), :],
                                  out_ref.at[pl.ds(t, 1), :],
                                  sem.at[0]).start()

        return carry

    jax.lax.fori_loop(0, T, _issue, 0, unroll=8)

    # Drain: one size-matched wait per issued DMA (all copies are the same
    # size, so after this loop *every* DMA of the block has completed).
    def _drain(t, carry):
        tok = tok_ref[base + t]

        @pl.when(tok >= 0)
        def _():
            pltpu.make_async_copy(table_hbm.at[pl.ds(tok, 1), :],
                                  out_ref.at[pl.ds(t, 1), :],
                                  sem.at[0]).wait()

        return carry

    jax.lax.fori_loop(0, T, _drain, 0, unroll=8)

    # Vectorized prompt substitution, only after ALL DMAs have landed and only
    # for blocks that actually contain prompt tokens (per-block SMEM count).
    @pl.when(cnt_ref[pl.program_id(0)] > 0)
    def _():
        slot = slot_ref[...]                                     # [T, 1]
        valid = slot >= 0
        p_pad = prm_ref.shape[0]
        onehot = (jnp.where(valid, slot, 0)
                  == jax.lax.broadcasted_iota(jnp.int32, (T, p_pad), 1))
        sub = jnp.dot(onehot.astype(prm_ref.dtype), prm_ref[...],
                      preferred_element_type=jnp.float32).astype(out_ref.dtype)
        out_ref[...] = jnp.where(valid, sub, out_ref[...])


def _resident_gather_kernel(ids_ref, table_ref, out_ref):
    # ids_ref  : VMEM int32 [T, 1]        already remapped (prompt -> V + slot)
    # table_ref: VMEM [V_ext_pad, E_pad]  embedding table ++ prompt rows
    # out_ref  : VMEM [T, E_pad]
    T = out_ref.shape[0]
    v_ext = table_ref.shape[0]
    onehot = (ids_ref[...]
              == jax.lax.broadcasted_iota(jnp.int32, (T, v_ext), 1))
    out_ref[...] = jnp.dot(onehot.astype(table_ref.dtype), table_ref[...],
                           preferred_element_type=jnp.float32
                           ).astype(out_ref.dtype)


# --------------------------------------------------------------------------- #
# Wrapper
# --------------------------------------------------------------------------- #
def prompt_embedding_forward(input_ids, embedding_table, prompt_embeddings,
                             prompt_token_id, *, block_tokens=256,
                             resident_table_bytes=2 << 20, force_path=None):
    """input_ids: [B, S] int; embedding_table: [V, E]; prompt_embeddings: [P, E]."""
    B, S = input_ids.shape
    V, E = embedding_table.shape
    P = prompt_embeddings.shape[0]
    N = B * S
    dtype = embedding_table.dtype
    itemsize = jnp.dtype(dtype).itemsize

    # ---- cheap integer preprocessing (plain XLA ops) ----------------------
    ids_flat = input_ids.reshape(-1).astype(jnp.int32)            # [N]
    mask = ids_flat == jnp.int32(prompt_token_id)
    ids_clean = jnp.where(mask, 0, ids_flat)

    # Substitution happens only when mask.sum() == P * B (torch semantics);
    # the k-th masked position in flattened row-major order gets prompt row
    # k % P (== prompt_embeddings.repeat(B, 1) scatter).
    do_sub = jnp.sum(mask.astype(jnp.int32)) == jnp.int32(P * B)
    k = jnp.cumsum(mask.astype(jnp.int32)) - 1
    slot = jnp.where(mask & do_sub, k % P, -1).astype(jnp.int32)  # [N]

    # ---- lane-dense padding of the embedding axis -------------------------
    E_pad = _round_up(E, 128)
    table = embedding_table
    prm = prompt_embeddings.astype(dtype)
    if E_pad != E:
        table = jnp.pad(table, ((0, 0), (0, E_pad - E)))
        prm = jnp.pad(prm, ((0, 0), (0, E_pad - E)))

    # ---- token-block tiling: keep 2 x (T, E_pad) output buffers in VMEM ----
    T = _round_up(min(block_tokens, _round_up(N, 8)), 8)
    budget = 40 << 20     # conservative across v5e/v6e/v7x (v7x: 64 MiB total)
    while T > 8 and 2 * T * E_pad * itemsize > budget:
        T = _round_up(T // 2, 8)
    N_pad = _round_up(N, T)
    num_blocks = N_pad // T

    # ---- path dispatch -----------------------------------------------------
    V_ext = V + P
    V_ext_pad = _round_up(V_ext, 8)
    if force_path is None:
        use_resident = (V_ext_pad * E_pad * itemsize <= resident_table_bytes
                        and V_ext_pad <= 4096)
    else:
        use_resident = force_path == "resident"

    if use_resident:
        # Fold substitution into the gather: append prompt rows to the table
        # and remap prompt positions to the appended rows.
        ids_ext = jnp.where(mask & do_sub,
                            jnp.int32(V) + (k % P).astype(jnp.int32),
                            ids_clean).astype(jnp.int32)
        if N_pad != N:
            ids_ext = jnp.pad(ids_ext, (0, N_pad - N))
        ids_2d = ids_ext.reshape(N_pad, 1)

        table_ext = jnp.concatenate([table, prm], axis=0)
        if V_ext_pad != V_ext:
            table_ext = jnp.pad(table_ext, ((0, V_ext_pad - V_ext), (0, 0)))

        est = (2 * T * E_pad * itemsize
               + 2 * V_ext_pad * E_pad * itemsize
               + T * V_ext_pad * 4)
        vmem_limit = int(min(max(est + (4 << 20), 32 << 20), 56 << 20))

        grid_spec = pltpu.PrefetchScalarGridSpec(
            num_scalar_prefetch=0,
            grid=(num_blocks,),
            in_specs=[
                pl.BlockSpec((T, 1), lambda i: (i, 0)),
                pl.BlockSpec((V_ext_pad, E_pad), lambda i: (0, 0)),
            ],
            out_specs=pl.BlockSpec((T, E_pad), lambda i: (i, 0)),
        )
        out_flat = pl.pallas_call(
            _resident_gather_kernel,
            out_shape=jax.ShapeDtypeStruct((N_pad, E_pad), dtype),
            grid_spec=grid_spec,
            compiler_params=pltpu.CompilerParams(
                dimension_semantics=("parallel",),
                vmem_limit_bytes=vmem_limit),
        )(ids_2d, table_ext)
    else:
        # Rows that will be substituted (slot >= 0) and padded tail rows are
        # never fetched: tok = -1 is the "skip DMA" sentinel in SMEM.
        tok_fetch = jnp.where(slot >= 0, -1, ids_clean).astype(jnp.int32)
        slot_pad = slot
        if N_pad != N:
            pad = N_pad - N
            tok_fetch = jnp.pad(tok_fetch, (0, pad), constant_values=-1)
            slot_pad = jnp.pad(slot_pad, (0, pad), constant_values=-1)
        blk_cnt = jnp.sum((slot_pad >= 0).reshape(num_blocks, T),
                          axis=1).astype(jnp.int32)
        slot_2d = slot_pad.reshape(N_pad, 1)

        P_pad = _round_up(P, 8)
        if P_pad != P:
            prm = jnp.pad(prm, ((0, P_pad - P), (0, 0)))

        est = (2 * T * E_pad * itemsize          # double-buffered output block
               + 2 * P_pad * E_pad * itemsize    # prompt rows
               + 4 * T * 4)                      # slot blocks
        vmem_limit = int(min(max(est + (4 << 20), 32 << 20), 56 << 20))

        grid_spec = pltpu.PrefetchScalarGridSpec(
            num_scalar_prefetch=2,
            grid=(num_blocks,),
            in_specs=[
                pl.BlockSpec((T, 1), lambda i, tok, cnt: (i, 0)),          # slot
                pl.BlockSpec(memory_space=pl.ANY),                         # table
                pl.BlockSpec((P_pad, E_pad), lambda i, tok, cnt: (0, 0)),  # prompts
            ],
            out_specs=pl.BlockSpec((T, E_pad), lambda i, tok, cnt: (i, 0)),
            scratch_shapes=[pltpu.SemaphoreType.DMA((1,))],
        )
        out_flat = pl.pallas_call(
            _dma_gather_kernel,
            out_shape=jax.ShapeDtypeStruct((N_pad, E_pad), dtype),
            grid_spec=grid_spec,
            compiler_params=pltpu.CompilerParams(
                dimension_semantics=("parallel",),
                vmem_limit_bytes=vmem_limit),
        )(tok_fetch, blk_cnt, slot_2d, table, prm)

    return out_flat[:N, :E].reshape(B, S, E)


# --------------------------------------------------------------------------- #
# Pure-JAX reference
# --------------------------------------------------------------------------- #
def prompt_embedding_reference(input_ids, embedding_table, prompt_embeddings,
                               prompt_token_id):
    B, S = input_ids.shape
    P = prompt_embeddings.shape[0]
    mask = input_ids == prompt_token_id
    ids_clean = jnp.where(mask, 0, input_ids)
    out = embedding_table[ids_clean]
    k = (jnp.cumsum(mask.reshape(-1).astype(jnp.int32)) - 1) % P
    sub = prompt_embeddings[k].reshape(B, S, -1)
    flag = jnp.sum(mask) == P * B
    return jnp.where((mask & flag)[..., None], sub, out)


if __name__ == "__main__":
    B, S, V, E, P = 2, 16, 64, 32, 3
    PROMPT_TOKEN_ID = 63

    key = jax.random.PRNGKey(0)
    k_emb, k_prm, k_ids = jax.random.split(key, 3)

    embedding_table = jax.random.normal(k_emb, (V, E), dtype=jnp.float32)
    prompt_embeddings = jax.random.normal(k_prm, (P, E), dtype=jnp.float32)

    # Each row starts with exactly P prompt tokens followed by ordinary ids.
    body = jax.random.randint(k_ids, (B, S - P), 1, V - 1, dtype=jnp.int32)
    prompt_cols = jnp.full((B, P), PROMPT_TOKEN_ID, dtype=jnp.int32)
    input_ids = jnp.concatenate([prompt_cols, body], axis=1)      # [B, S]

    ref = prompt_embedding_reference(input_ids, embedding_table,
                                     prompt_embeddings, PROMPT_TOKEN_ID)

    # Invalid prompt-token count -> torch skips the substitution entirely.
    bad_ids = input_ids.at[0, 0].set(1)
    ref_bad = prompt_embedding_reference(bad_ids, embedding_table,
                                         prompt_embeddings, PROMPT_TOKEN_ID)

    for path in ("dma", "resident"):
        out = prompt_embedding_forward(input_ids, embedding_table,
                                       prompt_embeddings, PROMPT_TOKEN_ID,
                                       block_tokens=8, force_path=path)
        out = jax.block_until_ready(out)
        assert out.shape == (B, S, E) and out.dtype == jnp.float32, path
        assert jnp.allclose(out, ref, atol=1e-5, rtol=1e-5), path

        out_bad = prompt_embedding_forward(bad_ids, embedding_table,
                                           prompt_embeddings, PROMPT_TOKEN_ID,
                                           block_tokens=8, force_path=path)
        out_bad = jax.block_until_ready(out_bad)
        assert jnp.allclose(out_bad, ref_bad, atol=1e-5, rtol=1e-5), path

    # Default tiling through the automatic (small-table -> resident) dispatch.
    out = prompt_embedding_forward(input_ids, embedding_table,
                                   prompt_embeddings, PROMPT_TOKEN_ID)
    out = jax.block_until_ready(out)
    assert jnp.allclose(out, ref, atol=1e-5, rtol=1e-5)

    print("KERNEL_OK")
</pallas_src>

<mosaic_0001>
module attributes {stable_mosaic.version = 11 : i64} {
  func.func @_dma_gather_kernel(%arg0: i32, %arg1: memref<32xi32, #tpu.memory_space<smem>>, %arg2: memref<4xi32, #tpu.memory_space<smem>>, %arg3: memref<8x1xi32, #tpu.memory_space<vmem>>, %arg4: memref<64x128xf32, #tpu.memory_space<any>>, %arg5: memref<8x128xf32, #tpu.memory_space<vmem>>, %arg6: memref<8x128xf32, #tpu.memory_space<vmem>>, %arg7: memref<1x!tpu.dma_semaphore, #tpu.memory_space<semaphore_mem>>) attributes {dimension_semantics = [#tpu.dimension_semantics<parallel>], iteration_bounds = array<i64: 4>, scalar_prefetch = 2 : i64, scratch_operands = 1 : i64, tpu.core_type = #tpu.core_type<tc>, window_params = [{transform_indices = @transform_0, window_bounds = array<i64: 8, 1>}, {}, {pipeline_mode = #tpu.pipeline_mode<synchronous>, transform_indices = @transform_2, window_bounds = array<i64: 8, 128>}, {transform_indices = @transform_3, window_bounds = array<i64: 8, 128>}]} {
    %c8_i32 = arith.constant 8 : i32
    %0 = arith.muli %arg0, %c8_i32 : i32
    %c0_i32 = arith.constant 0 : i32
    %1 = arith.addi %0, %c0_i32 : i32
    %2 = arith.index_cast %1 : i32 to index
    %3 = memref.load %arg1[%2] : memref<32xi32, #tpu.memory_space<smem>>
    %c0_i32_0 = arith.constant 0 : i32
    %4 = arith.cmpi sge, %3, %c0_i32_0 : i32
    %5 = arith.extui %4 : i1 to i32
    %c0_i32_1 = arith.constant 0 : i32
    %6 = arith.cmpi ne, %5, %c0_i32_1 : i32
    scf.if %6 {
      %c0_i32_44 = arith.constant 0 : i32
      %c0_i32_45 = arith.constant 0 : i32
      %102 = tpu.memref_slice %arg4[%3, %c0_i32_45] : memref<64x128xf32, #tpu.memory_space<any>> -> memref<1x128xf32, #tpu.memory_space<any>>
      %c0_i32_46 = arith.constant 0 : i32
      %103 = tpu.memref_slice %arg6[%c0_i32, %c0_i32_46] : memref<8x128xf32, #tpu.memory_space<vmem>> -> memref<1x128xf32, #tpu.memory_space<vmem>>
      %104 = tpu.memref_slice %arg7[%c0_i32_44] : memref<1x!tpu.dma_semaphore, #tpu.memory_space<semaphore_mem>> -> memref<1x!tpu.dma_semaphore, #tpu.memory_space<semaphore_mem>>
      %105 = tpu.memref_squeeze %104 : memref<1x!tpu.dma_semaphore, #tpu.memory_space<semaphore_mem>> -> memref<!tpu.dma_semaphore, #tpu.memory_space<semaphore_mem>>
      tpu.enqueue_dma source(%102 : memref<1x128xf32, #tpu.memory_space<any>>) target(%103 : memref<1x128xf32, #tpu.memory_space<vmem>>) target_semaphore(%105 : memref<!tpu.dma_semaphore, #tpu.memory_space<semaphore_mem>>)
    } else {
    }
    %c1_i32 = arith.constant 1 : i32
    %7 = arith.addi %0, %c1_i32 : i32
    %8 = arith.index_cast %7 : i32 to index
    %9 = memref.load %arg1[%8] : memref<32xi32, #tpu.memory_space<smem>>
    %c0_i32_2 = arith.constant 0 : i32
    %10 = arith.cmpi sge, %9, %c0_i32_2 : i32
    %11 = arith.extui %10 : i1 to i32
    %c0_i32_3 = arith.constant 0 : i32
    %12 = arith.cmpi ne, %11, %c0_i32_3 : i32
    scf.if %12 {
      %c0_i32_44 = arith.constant 0 : i32
      %c0_i32_45 = arith.constant 0 : i32
      %102 = tpu.memref_slice %arg4[%9, %c0_i32_45] : memref<64x128xf32, #tpu.memory_space<any>> -> memref<1x128xf32, #tpu.memory_space<any>>
      %c0_i32_46 = arith.constant 0 : i32
      %103 = tpu.memref_slice %arg6[%c1_i32, %c0_i32_46] : memref<8x128xf32, #tpu.memory_space<vmem>> -> memref<1x128xf32, #tpu.memory_space<vmem>>
      %104 = tpu.memref_slice %arg7[%c0_i32_44] : memref<1x!tpu.dma_semaphore, #tpu.memory_space<semaphore_mem>> -> memref<1x!tpu.dma_semaphore, #tpu.memory_space<semaphore_mem>>
      %105 = tpu.memref_squeeze %104 : memref<1x!tpu.dma_semaphore, #tpu.memory_space<semaphore_mem>> -> memref<!tpu.dma_semaphore, #tpu.memory_space<semaphore_mem>>
      tpu.enqueue_dma source(%102 : memref<1x128xf32, #tpu.memory_space<any>>) target(%103 : memref<1x128xf32, #tpu.memory_space<vmem>>) target_semaphore(%105 : memref<!tpu.dma_semaphore, #tpu.memory_space<semaphore_mem>>)
    } else {
    }
    %c2_i32 = arith.constant 2 : i32
    %13 = arith.addi %0, %c2_i32 : i32
    %14 = arith.index_cast %13 : i32 to index
    %15 = memref.load %arg1[%14] : memref<32xi32, #tpu.memory_space<smem>>
    %c0_i32_4 = arith.constant 0 : i32
    %16 = arith.cmpi sge, %15, %c0_i32_4 : i32
    %17 = arith.extui %16 : i1 to i32
    %c0_i32_5 = arith.constant 0 : i32
    %18 = arith.cmpi ne, %17, %c0_i32_5 : i32
    scf.if %18 {
      %c0_i32_44 = arith.constant 0 : i32
      %c0_i32_45 = arith.constant 0 : i32
      %102 = tpu.memref_slice %arg4[%15, %c0_i32_45] : memref<64x128xf32, #tpu.memory_space<any>> -> memref<1x128xf32, #tpu.memory_space<any>>
      %c0_i32_46 = arith.constant 0 : i32
      %103 = tpu.memref_slice %arg6[%c2_i32, %c0_i32_46] : memref<8x128xf32, #tpu.memory_space<vmem>> -> memref<1x128xf32, #tpu.memory_space<vmem>>
      %104 = tpu.memref_slice %arg7[%c0_i32_44] : memref<1x!tpu.dma_semaphore, #tpu.memory_space<semaphore_mem>> -> memref<1x!tpu.dma_semaphore, #tpu.memory_space<semaphore_mem>>
      %105 = tpu.memref_squeeze %104 : memref<1x!tpu.dma_semaphore, #tpu.memory_space<semaphore_mem>> -> memref<!tpu.dma_semaphore, #tpu.memory_space<semaphore_mem>>
      tpu.enqueue_dma source(%102 : memref<1x128xf32, #tpu.memory_space<any>>) target(%103 : memref<1x128xf32, #tpu.memory_space<vmem>>) target_semaphore(%105 : memref<!tpu.dma_semaphore, #tpu.memory_space<semaphore_mem>>)
    } else {
    }
    %c3_i32 = arith.constant 3 : i32
    %19 = arith.addi %0, %c3_i32 : i32
    %20 = arith.index_cast %19 : i32 to index
    %21 = memref.load %arg1[%20] : memref<32xi32, #tpu.memory_space<smem>>
    %c0_i32_6 = arith.constant 0 : i32
    %22 = arith.cmpi sge, %21, %c0_i32_6 : i32
    %23 = arith.extui %22 : i1 to i32
    %c0_i32_7 = arith.constant 0 : i32
    %24 = arith.cmpi ne, %23, %c0_i32_7 : i32
    scf.if %24 {
      %c0_i32_44 = arith.constant 0 : i32
      %c0_i32_45 = arith.constant 0 : i32
      %102 = tpu.memref_slice %arg4[%21, %c0_i32_45] : memref<64x128xf32, #tpu.memory_space<any>> -> memref<1x128xf32, #tpu.memory_space<any>>
      %c0_i32_46 = arith.constant 0 : i32
      %103 = tpu.memref_slice %arg6[%c3_i32, %c0_i32_46] : memref<8x128xf32, #tpu.memory_space<vmem>> -> memref<1x128xf32, #tpu.memory_space<vmem>>
      %104 = tpu.memref_slice %arg7[%c0_i32_44] : memref<1x!tpu.dma_semaphore, #tpu.memory_space<semaphore_mem>> -> memref<1x!tpu.dma_semaphore, #tpu.memory_space<semaphore_mem>>
      %105 = tpu.memref_squeeze %104 : memref<1x!tpu.dma_semaphore, #tpu.memory_space<semaphore_mem>> -> memref<!tpu.dma_semaphore, #tpu.memory_space<semaphore_mem>>
      tpu.enqueue_dma source(%102 : memref<1x128xf32, #tpu.memory_space<any>>) target(%103 : memref<1x128xf32, #tpu.memory_space<vmem>>) target_semaphore(%105 : memref<!tpu.dma_semaphore, #tpu.memory_space<semaphore_mem>>)
    } else {
    }
    %c4_i32 = arith.constant 4 : i32
    %25 = arith.addi %0, %c4_i32 : i32
    %26 = arith.index_cast %25 : i32 to index
    %27 = memref.load %arg1[%26] : memref<32xi32, #tpu.memory_space<smem>>
    %c0_i32_8 = arith.constant 0 : i32
    %28 = arith.cmpi sge, %27, %c0_i32_8 : i32
    %29 = arith.extui %28 : i1 to i32
    %c0_i32_9 = arith.constant 0 : i32
    %30 = arith.cmpi ne, %29, %c0_i32_9 : i32
    scf.if %30 {
      %c0_i32_44 = arith.constant 0 : i32
      %c0_i32_45 = arith.constant 0 : i32
      %102 = tpu.memref_slice %arg4[%27, %c0_i32_45] : memref<64x128xf32, #tpu.memory_space<any>> -> memref<1x128xf32, #tpu.memory_space<any>>
      %c0_i32_46 = arith.constant 0 : i32
      %103 = tpu.memref_slice %arg6[%c4_i32, %c0_i32_46] : memref<8x128xf32, #tpu.memory_space<vmem>> -> memref<1x128xf32, #tpu.memory_space<vmem>>
      %104 = tpu.memref_slice %arg7[%c0_i32_44] : memref<1x!tpu.dma_semaphore, #tpu.memory_space<semaphore_mem>> -> memref<1x!tpu.dma_semaphore, #tpu.memory_space<semaphore_mem>>
      %105 = tpu.memref_squeeze %104 : memref<1x!tpu.dma_semaphore, #tpu.memory_space<semaphore_mem>> -> memref<!tpu.dma_semaphore, #tpu.memory_space<semaphore_mem>>
      tpu.enqueue_dma source(%102 : memref<1x128xf32, #tpu.memory_space<any>>) target(%103 : memref<1x128xf32, #tpu.memory_space<vmem>>) target_semaphore(%105 : memref<!tpu.dma_semaphore, #tpu.memory_space<semaphore_mem>>)
    } else {
    }
    %c5_i32 = arith.constant 5 : i32
    %31 = arith.addi %0, %c5_i32 : i32
    %32 = arith.index_cast %31 : i32 to index
    %33 = memref.load %arg1[%32] : memref<32xi32, #tpu.memory_space<smem>>
    %c0_i32_10 = arith.constant 0 : i32
    %34 = arith.cmpi sge, %33, %c0_i32_10 : i32
    %35 = arith.extui %34 : i1 to i32
    %c0_i32_11 = arith.constant 0 : i32
    %36 = arith.cmpi ne, %35, %c0_i32_11 : i32
    scf.if %36 {
      %c0_i32_44 = arith.constant 0 : i32
      %c0_i32_45 = arith.constant 0 : i32
      %102 = tpu.memref_slice %arg4[%33, %c0_i32_45] : memref<64x128xf32, #tpu.memory_space<any>> -> memref<1x128xf32, #tpu.memory_space<any>>
      %c0_i32_46 = arith.constant 0 : i32
      %103 = tpu.memref_slice %arg6[%c5_i32, %c0_i32_46] : memref<8x128xf32, #tpu.memory_space<vmem>> -> memref<1x128xf32, #tpu.memory_space<vmem>>
      %104 = tpu.memref_slice %arg7[%c0_i32_44] : memref<1x!tpu.dma_semaphore, #tpu.memory_space<semaphore_mem>> -> memref<1x!tpu.dma_semaphore, #tpu.memory_space<semaphore_mem>>
      %105 = tpu.memref_squeeze %104 : memref<1x!tpu.dma_semaphore, #tpu.memory_space<semaphore_mem>> -> memref<!tpu.dma_semaphore, #tpu.memory_space<semaphore_mem>>
      tpu.enqueue_dma source(%102 : memref<1x128xf32, #tpu.memory_space<any>>) target(%103 : memref<1x128xf32, #tpu.memory_space<vmem>>) target_semaphore(%105 : memref<!tpu.dma_semaphore, #tpu.memory_space<semaphore_mem>>)
    } else {
    }
    %c6_i32 = arith.constant 6 : i32
    %37 = arith.addi %0, %c6_i32 : i32
    %38 = arith.index_cast %37 : i32 to index
    %39 = memref.load %arg1[%38] : memref<32xi32, #tpu.memory_space<smem>>
    %c0_i32_12 = arith.constant 0 : i32
    %40 = arith.cmpi sge, %39, %c0_i32_12 : i32
    %41 = arith.extui %40 : i1 to i32
    %c0_i32_13 = arith.constant 0 : i32
    %42 = arith.cmpi ne, %41, %c0_i32_13 : i32
    scf.if %42 {
      %c0_i32_44 = arith.constant 0 : i32
      %c0_i32_45 = arith.constant 0 : i32
      %102 = tpu.memref_slice %arg4[%39, %c0_i32_45] : memref<64x128xf32, #tpu.memory_space<any>> -> memref<1x128xf32, #tpu.memory_space<any>>
      %c0_i32_46 = arith.constant 0 : i32
      %103 = tpu.memref_slice %arg6[%c6_i32, %c0_i32_46] : memref<8x128xf32, #tpu.memory_space<vmem>> -> memref<1x128xf32, #tpu.memory_space<vmem>>
      %104 = tpu.memref_slice %arg7[%c0_i32_44] : memref<1x!tpu.dma_semaphore, #tpu.memory_space<semaphore_mem>> -> memref<1x!tpu.dma_semaphore, #tpu.memory_space<semaphore_mem>>
      %105 = tpu.memref_squeeze %104 : memref<1x!tpu.dma_semaphore, #tpu.memory_space<semaphore_mem>> -> memref<!tpu.dma_semaphore, #tpu.memory_space<semaphore_mem>>
      tpu.enqueue_dma source(%102 : memref<1x128xf32, #tpu.memory_space<any>>) target(%103 : memref<1x128xf32, #tpu.memory_space<vmem>>) target_semaphore(%105 : memref<!tpu.dma_semaphore, #tpu.memory_space<semaphore_mem>>)
    } else {
    }
    %c7_i32 = arith.constant 7 : i32
    %43 = arith.addi %0, %c7_i32 : i32
    %44 = arith.index_cast %43 : i32 to index
    %45 = memref.load %arg1[%44] : memref<32xi32, #tpu.memory_space<smem>>
    %c0_i32_14 = arith.constant 0 : i32
    %46 = arith.cmpi sge, %45, %c0_i32_14 : i32
    %47 = arith.extui %46 : i1 to i32
    %c0_i32_15 = arith.constant 0 : i32
    %48 = arith.cmpi ne, %47, %c0_i32_15 : i32
    scf.if %48 {
      %c0_i32_44 = arith.constant 0 : i32
      %c0_i32_45 = arith.constant 0 : i32
      %102 = tpu.memref_slice %arg4[%45, %c0_i32_45] : memref<64x128xf32, #tpu.memory_space<any>> -> memref<1x128xf32, #tpu.memory_space<any>>
      %c0_i32_46 = arith.constant 0 : i32
      %103 = tpu.memref_slice %arg6[%c7_i32, %c0_i32_46] : memref<8x128xf32, #tpu.memory_space<vmem>> -> memref<1x128xf32, #tpu.memory_space<vmem>>
      %104 = tpu.memref_slice %arg7[%c0_i32_44] : memref<1x!tpu.dma_semaphore, #tpu.memory_space<semaphore_mem>> -> memref<1x!tpu.dma_semaphore, #tpu.memory_space<semaphore_mem>>
      %105 = tpu.memref_squeeze %104 : memref<1x!tpu.dma_semaphore, #tpu.memory_space<semaphore_mem>> -> memref<!tpu.dma_semaphore, #tpu.memory_space<semaphore_mem>>
      tpu.enqueue_dma source(%102 : memref<1x128xf32, #tpu.memory_space<any>>) target(%103 : memref<1x128xf32, #tpu.memory_space<vmem>>) target_semaphore(%105 : memref<!tpu.dma_semaphore, #tpu.memory_space<semaphore_mem>>)
    } else {
    }
    %c8_i32_16 = arith.constant 8 : i32
    %c0_i32_17 = arith.constant 0 : i32
    %49 = arith.addi %0, %c0_i32_17 : i32
    %50 = arith.index_cast %49 : i32 to index
    %51 = memref.load %arg1[%50] : memref<32xi32, #tpu.memory_space<smem>>
    %c0_i32_18 = arith.constant 0 : i32
    %52 = arith.cmpi sge, %51, %c0_i32_18 : i32
    %53 = arith.extui %52 : i1 to i32
    %c0_i32_19 = arith.constant 0 : i32
    %54 = arith.cmpi ne, %53, %c0_i32_19 : i32
    scf.if %54 {
      %c0_i32_44 = arith.constant 0 : i32
      %c0_i32_45 = arith.constant 0 : i32
      %102 = tpu.memref_slice %arg4[%51, %c0_i32_45] : memref<64x128xf32, #tpu.memory_space<any>> -> memref<1x128xf32, #tpu.memory_space<any>>
      %c0_i32_46 = arith.constant 0 : i32
      %103 = tpu.memref_slice %arg6[%c0_i32_17, %c0_i32_46] : memref<8x128xf32, #tpu.memory_space<vmem>> -> memref<1x128xf32, #tpu.memory_space<vmem>>
      %104 = tpu.memref_slice %arg7[%c0_i32_44] : memref<1x!tpu.dma_semaphore, #tpu.memory_space<semaphore_mem>> -> memref<1x!tpu.dma_semaphore, #tpu.memory_space<semaphore_mem>>
      %105 = tpu.memref_squeeze %104 : memref<1x!tpu.dma_semaphore, #tpu.memory_space<semaphore_mem>> -> memref<!tpu.dma_semaphore, #tpu.memory_space<semaphore_mem>>
      tpu.wait_dma2 semaphore(%105 : memref<!tpu.dma_semaphore, #tpu.memory_space<semaphore_mem>>) src(%102 : memref<1x128xf32, #tpu.memory_space<any>>) dst(%103 : memref<1x128xf32, #tpu.memory_space<vmem>>)
    } else {
    }
    %c1_i32_20 = arith.constant 1 : i32
    %55 = arith.addi %0, %c1_i32_20 : i32
    %56 = arith.index_cast %55 : i32 to index
    %57 = memref.load %arg1[%56] : memref<32xi32, #tpu.memory_space<smem>>
    %c0_i32_21 = arith.constant 0 : i32
    %58 = arith.cmpi sge, %57, %c0_i32_21 : i32
    %59 = arith.extui %58 : i1 to i32
    %c0_i32_22 = arith.constant 0 : i32
    %60 = arith.cmpi ne, %59, %c0_i32_22 : i32
    scf.if %60 {
      %c0_i32_44 = arith.constant 0 : i32
      %c0_i32_45 = arith.constant 0 : i32
      %102 = tpu.memref_slice %arg4[%57, %c0_i32_45] : memref<64x128xf32, #tpu.memory_space<any>> -> memref<1x128xf32, #tpu.memory_space<any>>
      %c0_i32_46 = arith.constant 0 : i32
      %103 = tpu.memref_slice %arg6[%c1_i32_20, %c0_i32_46] : memref<8x128xf32, #tpu.memory_space<vmem>> -> memref<1x128xf32, #tpu.memory_space<vmem>>
      %104 = tpu.memref_slice %arg7[%c0_i32_44] : memref<1x!tpu.dma_semaphore, #tpu.memory_space<semaphore_mem>> -> memref<1x!tpu.dma_semaphore, #tpu.memory_space<semaphore_mem>>
      %105 = tpu.memref_squeeze %104 : memref<1x!tpu.dma_semaphore, #tpu.memory_space<semaphore_mem>> -> memref<!tpu.dma_semaphore, #tpu.memory_space<semaphore_mem>>
      tpu.wait_dma2 semaphore(%105 : memref<!tpu.dma_semaphore, #tpu.memory_space<semaphore_mem>>) src(%102 : memref<1x128xf32, #tpu.memory_space<any>>) dst(%103 : memref<1x128xf32, #tpu.memory_space<vmem>>)
    } else {
    }
    %c2_i32_23 = arith.constant 2 : i32
    %61 = arith.addi %0, %c2_i32_23 : i32
    %62 = arith.index_cast %61 : i32 to index
    %63 = memref.load %arg1[%62] : memref<32xi32, #tpu.memory_space<smem>>
    %c0_i32_24 = arith.constant 0 : i32
    %64 = arith.cmpi sge, %63, %c0_i32_24 : i32
    %65 = arith.extui %64 : i1 to i32
    %c0_i32_25 = arith.constant 0 : i32
    %66 = arith.cmpi ne, %65, %c0_i32_25 : i32
    scf.if %66 {
      %c0_i32_44 = arith.constant 0 : i32
      %c0_i32_45 = arith.constant 0 : i32
      %102 = tpu.memref_slice %arg4[%63, %c0_i32_45] : memref<64x128xf32, #tpu.memory_space<any>> -> memref<1x128xf32, #tpu.memory_space<any>>
      %c0_i32_46 = arith.constant 0 : i32
      %103 = tpu.memref_slice %arg6[%c2_i32_23, %c0_i32_46] : memref<8x128xf32, #tpu.memory_space<vmem>> -> memref<1x128xf32, #tpu.memory_space<vmem>>
      %104 = tpu.memref_slice %arg7[%c0_i32_44] : memref<1x!tpu.dma_semaphore, #tpu.memory_space<semaphore_mem>> -> memref<1x!tpu.dma_semaphore, #tpu.memory_space<semaphore_mem>>
      %105 = tpu.memref_squeeze %104 : memref<1x!tpu.dma_semaphore, #tpu.memory_space<semaphore_mem>> -> memref<!tpu.dma_semaphore, #tpu.memory_space<semaphore_mem>>
      tpu.wait_dma2 semaphore(%105 : memref<!tpu.dma_semaphore, #tpu.memory_space<semaphore_mem>>) src(%102 : memref<1x128xf32, #tpu.memory_space<any>>) dst(%103 : memref<1x128xf32, #tpu.memory_space<vmem>>)
    } else {
    }
    %c3_i32_26 = arith.constant 3 : i32
    %67 = arith.addi %0, %c3_i32_26 : i32
    %68 = arith.index_cast %67 : i32 to index
    %69 = memref.load %arg1[%68] : memref<32xi32, #tpu.memory_space<smem>>
    %c0_i32_27 = arith.constant 0 : i32
    %70 = arith.cmpi sge, %69, %c0_i32_27 : i32
    %71 = arith.extui %70 : i1 to i32
    %c0_i32_28 = arith.constant 0 : i32
    %72 = arith.cmpi ne, %71, %c0_i32_28 : i32
    scf.if %72 {
      %c0_i32_44 = arith.constant 0 : i32
      %c0_i32_45 = arith.constant 0 : i32
      %102 = tpu.memref_slice %arg4[%69, %c0_i32_45] : memref<64x128xf32, #tpu.memory_space<any>> -> memref<1x128xf32, #tpu.memory_space<any>>
      %c0_i32_46 = arith.constant 0 : i32
      %103 = tpu.memref_slice %arg6[%c3_i32_26, %c0_i32_46] : memref<8x128xf32, #tpu.memory_space<vmem>> -> memref<1x128xf32, #tpu.memory_space<vmem>>
      %104 = tpu.memref_slice %arg7[%c0_i32_44] : memref<1x!tpu.dma_semaphore, #tpu.memory_space<semaphore_mem>> -> memref<1x!tpu.dma_semaphore, #tpu.memory_space<semaphore_mem>>
      %105 = tpu.memref_squeeze %104 : memref<1x!tpu.dma_semaphore, #tpu.memory_space<semaphore_mem>> -> memref<!tpu.dma_semaphore, #tpu.memory_space<semaphore_mem>>
      tpu.wait_dma2 semaphore(%105 : memref<!tpu.dma_semaphore, #tpu.memory_space<semaphore_mem>>) src(%102 : memref<1x128xf32, #tpu.memory_space<any>>) dst(%103 : memref<1x128xf32, #tpu.memory_space<vmem>>)
    } else {
    }
    %c4_i32_29 = arith.constant 4 : i32
    %73 = arith.addi %0, %c4_i32_29 : i32
    %74 = arith.index_cast %73 : i32 to index
    %75 = memref.load %arg1[%74] : memref<32xi32, #tpu.memory_space<smem>>
    %c0_i32_30 = arith.constant 0 : i32
    %76 = arith.cmpi sge, %75, %c0_i32_30 : i32
    %77 = arith.extui %76 : i1 to i32
    %c0_i32_31 = arith.constant 0 : i32
    %78 = arith.cmpi ne, %77, %c0_i32_31 : i32
    scf.if %78 {
      %c0_i32_44 = arith.constant 0 : i32
      %c0_i32_45 = arith.constant 0 : i32
      %102 = tpu.memref_slice %arg4[%75, %c0_i32_45] : memref<64x128xf32, #tpu.memory_space<any>> -> memref<1x128xf32, #tpu.memory_space<any>>
      %c0_i32_46 = arith.constant 0 : i32
      %103 = tpu.memref_slice %arg6[%c4_i32_29, %c0_i32_46] : memref<8x128xf32, #tpu.memory_space<vmem>> -> memref<1x128xf32, #tpu.memory_space<vmem>>
      %104 = tpu.memref_slice %arg7[%c0_i32_44] : memref<1x!tpu.dma_semaphore, #tpu.memory_space<semaphore_mem>> -> memref<1x!tpu.dma_semaphore, #tpu.memory_space<semaphore_mem>>
      %105 = tpu.memref_squeeze %104 : memref<1x!tpu.dma_semaphore, #tpu.memory_space<semaphore_mem>> -> memref<!tpu.dma_semaphore, #tpu.memory_space<semaphore_mem>>
      tpu.wait_dma2 semaphore(%105 : memref<!tpu.dma_semaphore, #tpu.memory_space<semaphore_mem>>) src(%102 : memref<1x128xf32, #tpu.memory_space<any>>) dst(%103 : memref<1x128xf32, #tpu.memory_space<vmem>>)
    } else {
    }
    %c5_i32_32 = arith.constant 5 : i32
    %79 = arith.addi %0, %c5_i32_32 : i32
    %80 = arith.index_cast %79 : i32 to index
    %81 = memref.load %arg1[%80] : memref<32xi32, #tpu.memory_space<smem>>
    %c0_i32_33 = arith.constant 0 : i32
    %82 = arith.cmpi sge, %81, %c0_i32_33 : i32
    %83 = arith.extui %82 : i1 to i32
    %c0_i32_34 = arith.constant 0 : i32
    %84 = arith.cmpi ne, %83, %c0_i32_34 : i32
    scf.if %84 {
      %c0_i32_44 = arith.constant 0 : i32
      %c0_i32_45 = arith.constant 0 : i32
      %102 = tpu.memref_slice %arg4[%81, %c0_i32_45] : memref<64x128xf32, #tpu.memory_space<any>> -> memref<1x128xf32, #tpu.memory_space<any>>
      %c0_i32_46 = arith.constant 0 : i32
      %103 = tpu.memref_slice %arg6[%c5_i32_32, %c0_i32_46] : memref<8x128xf32, #tpu.memory_space<vmem>> -> memref<1x128xf32, #tpu.memory_space<vmem>>
      %104 = tpu.memref_slice %arg7[%c0_i32_44] : memref<1x!tpu.dma_semaphore, #tpu.memory_space<semaphore_mem>> -> memref<1x!tpu.dma_semaphore, #tpu.memory_space<semaphore_mem>>
      %105 = tpu.memref_squeeze %104 : memref<1x!tpu.dma_semaphore, #tpu.memory_space<semaphore_mem>> -> memref<!tpu.dma_semaphore, #tpu.memory_space<semaphore_mem>>
      tpu.wait_dma2 semaphore(%105 : memref<!tpu.dma_semaphore, #tpu.memory_space<semaphore_mem>>) src(%102 : memref<1x128xf32, #tpu.memory_space<any>>) dst(%103 : memref<1x128xf32, #tpu.memory_space<vmem>>)
    } else {
    }
    %c6_i32_35 = arith.constant 6 : i32
    %85 = arith.addi %0, %c6_i32_35 : i32
    %86 = arith.index_cast %85 : i32 to index
    %87 = memref.load %arg1[%86] : memref<32xi32, #tpu.memory_space<smem>>
    %c0_i32_36 = arith.constant 0 : i32
    %88 = arith.cmpi sge, %87, %c0_i32_36 : i32
    %89 = arith.extui %88 : i1 to i32
    %c0_i32_37 = arith.constant 0 : i32
    %90 = arith.cmpi ne, %89, %c0_i32_37 : i32
    scf.if %90 {
      %c0_i32_44 = arith.constant 0 : i32
      %c0_i32_45 = arith.constant 0 : i32
      %102 = tpu.memref_slice %arg4[%87, %c0_i32_45] : memref<64x128xf32, #tpu.memory_space<any>> -> memref<1x128xf32, #tpu.memory_space<any>>
      %c0_i32_46 = arith.constant 0 : i32
      %103 = tpu.memref_slice %arg6[%c6_i32_35, %c0_i32_46] : memref<8x128xf32, #tpu.memory_space<vmem>> -> memref<1x128xf32, #tpu.memory_space<vmem>>
      %104 = tpu.memref_slice %arg7[%c0_i32_44] : memref<1x!tpu.dma_semaphore, #tpu.memory_space<semaphore_mem>> -> memref<1x!tpu.dma_semaphore, #tpu.memory_space<semaphore_mem>>
      %105 = tpu.memref_squeeze %104 : memref<1x!tpu.dma_semaphore, #tpu.memory_space<semaphore_mem>> -> memref<!tpu.dma_semaphore, #tpu.memory_space<semaphore_mem>>
      tpu.wait_dma2 semaphore(%105 : memref<!tpu.dma_semaphore, #tpu.memory_space<semaphore_mem>>) src(%102 : memref<1x128xf32, #tpu.memory_space<any>>) dst(%103 : memref<1x128xf32, #tpu.memory_space<vmem>>)
    } else {
    }
    %c7_i32_38 = arith.constant 7 : i32
    %91 = arith.addi %0, %c7_i32_38 : i32
    %92 = arith.index_cast %91 : i32 to index
    %93 = memref.load %arg1[%92] : memref<32xi32, #tpu.memory_space<smem>>
    %c0_i32_39 = arith.constant 0 : i32
    %94 = arith.cmpi sge, %93, %c0_i32_39 : i32
    %95 = arith.extui %94 : i1 to i32
    %c0_i32_40 = arith.constant 0 : i32
    %96 = arith.cmpi ne, %95, %c0_i32_40 : i32
    scf.if %96 {
      %c0_i32_44 = arith.constant 0 : i32
      %c0_i32_45 = arith.constant 0 : i32
      %102 = tpu.memref_slice %arg4[%93, %c0_i32_45] : memref<64x128xf32, #tpu.memory_space<any>> -> memref<1x128xf32, #tpu.memory_space<any>>
      %c0_i32_46 = arith.constant 0 : i32
      %103 = tpu.memref_slice %arg6[%c7_i32_38, %c0_i32_46] : memref<8x128xf32, #tpu.memory_space<vmem>> -> memref<1x128xf32, #tpu.memory_space<vmem>>
      %104 = tpu.memref_slice %arg7[%c0_i32_44] : memref<1x!tpu.dma_semaphore, #tpu.memory_space<semaphore_mem>> -> memref<1x!tpu.dma_semaphore, #tpu.memory_space<semaphore_mem>>
      %105 = tpu.memref_squeeze %104 : memref<1x!tpu.dma_semaphore, #tpu.memory_space<semaphore_mem>> -> memref<!tpu.dma_semaphore, #tpu.memory_space<semaphore_mem>>
      tpu.wait_dma2 semaphore(%105 : memref<!tpu.dma_semaphore, #tpu.memory_space<semaphore_mem>>) src(%102 : memref<1x128xf32, #tpu.memory_space<any>>) dst(%103 : memref<1x128xf32, #tpu.memory_space<vmem>>)
    } else {
    }
    %c8_i32_41 = arith.constant 8 : i32
    %97 = arith.index_cast %arg0 : i32 to index
    %98 = memref.load %arg2[%97] : memref<4xi32, #tpu.memory_space<smem>>
    %c0_i32_42 = arith.constant 0 : i32
    %99 = arith.cmpi sgt, %98, %c0_i32_42 : i32
    %100 = arith.extui %99 : i1 to i32
    %c0_i32_43 = arith.constant 0 : i32
    %101 = arith.cmpi ne, %100, %c0_i32_43 : i32
    scf.if %101 {
      %c0 = arith.constant 0 : index
      %c0_44 = arith.constant 0 : index
      %102 = vector.load %arg3[%c0, %c0_44] : memref<8x1xi32, #tpu.memory_space<vmem>>, vector<8x1xi32>
      %c0_i32_45 = arith.constant 0 : i32
      %103 = vector.broadcast %c0_i32_45 : i32 to vector<8x1xi32>
      %104 = arith.cmpi sge, %102, %103 : vector<8x1xi32>
      %c0_i32_46 = arith.constant 0 : i32
      %105 = vector.broadcast %c0_i32_46 : i32 to vector<8x1xi32>
      %106 = arith.select %104, %102, %105 : vector<8x1xi1>, vector<8x1xi32>
      %107 = tpu.iota {dimensions = array<i32: 1>} : vector<8x8xi32>
      %108 = vector.broadcast %106 : vector<8x1xi32> to vector<8x8xi32>
      %109 = arith.cmpi eq, %108, %107 : vector<8x8xi32>
      %110 = arith.extui %109 : vector<8x8xi1> to vector<8x8xi32>
      %111 = arith.sitofp %110 : vector<8x8xi32> to vector<8x8xf32>
      %c0_47 = arith.constant 0 : index
      %c0_48 = arith.constant 0 : index
      %112 = vector.load %arg5[%c0_47, %c0_48] : memref<8x128xf32, #tpu.memory_space<vmem>>, vector<8x128xf32>
      %cst = arith.constant dense<0.000000e+00> : vector<8x128xf32>
      %113 = tpu.matmul %111, %112, %cst {dimension_numbers = #tpu.dot_dimension_numbers<[1], [0], [0], [1], [0, 0, 1, 1], [], []>} : vector<8x8xf32>, vector<8x128xf32>, vector<8x128xf32> -> vector<8x128xf32>
      %c0_49 = arith.constant 0 : index
      %c0_50 = arith.constant 0 : index
      %114 = vector.load %arg6[%c0_49, %c0_50] : memref<8x128xf32, #tpu.memory_space<vmem>>, vector<8x128xf32>
      %115 = vector.shape_cast %104 : vector<8x1xi1> to vector<8x1xi1>
      %116 = vector.broadcast %115 : vector<8x1xi1> to vector<8x128xi1>
      %117 = arith.select %116, %113, %114 : vector<8x128xi1>, vector<8x128xf32>
      %c0_51 = arith.constant 0 : index
      %c0_52 = arith.constant 0 : index
      %118 = vector.load %arg6[%c0_51, %c0_52] : memref<8x128xf32, #tpu.memory_space<vmem>>, vector<8x128xf32>
      tpu.vector_store %arg6[%c0_51, %c0_52], %117 {strides = array<i32>} : memref<8x128xf32, #tpu.memory_space<vmem>>, vector<8x128xf32>,
    } else {
    }
    return
  }
  func.func @transform_0(%arg0: i32, %arg1: memref<32xi32, #tpu.memory_space<smem>>, %arg2: memref<4xi32, #tpu.memory_space<smem>>) -> (i32, i32) {
    %c0_i32 = arith.constant 0 : i32
    %c0_i32_0 = arith.constant 0 : i32
    return %arg0, %c0_i32 : i32, i32
  }
  func.func @transform_2(%arg0: i32, %arg1: memref<32xi32, #tpu.memory_space<smem>>, %arg2: memref<4xi32, #tpu.memory_space<smem>>) -> (i32, i32) {
    %c0_i32 = arith.constant 0 : i32
    %c0_i32_0 = arith.constant 0 : i32
    %c0_i32_1 = arith.constant 0 : i32
    return %c0_i32, %c0_i32_0 : i32, i32
  }
  func.func @transform_3(%arg0: i32, %arg1: memref<32xi32, #tpu.memory_space<smem>>, %arg2: memref<4xi32, #tpu.memory_space<smem>>) -> (i32, i32) {
    %c0_i32 = arith.constant 0 : i32
    %c0_i32_0 = arith.constant 0 : i32
    return %arg0, %c0_i32 : i32, i32
  }
}

</mosaic_0001>

<bundles_post_ra>
// kernel: tpu_custom_call.1
= control target key start
LH: loop header
LB: loop body
LE: loop exit
PB: predicated region body
PF: predicated region fallthrough
CT: control target
= control target key end

     0   :  { %s1434_s0 = inlined_call_operand.vmem [shape: s32[32], index: 0, kind: input, shape index: {}]   ;;  %s1435_s2 = inlined_call_operand.vmem [shape: s32[32,1], index: 2, kind: input, shape index: {}]   ;;  %s1436_s3 = inlined_call_operand.hbm [shape: f32[64,128], index: 3, kind: input, shape index: {}]   ;;  %s1437_s4 = inlined_call_operand.vmem [shape: f32[8,128], index: 4, kind: input, shape index: {}]   ;;  %s1438_s5 = inlined_call_operand.hbm [shape: f32[32,128], index: 5, kind: output, shape index: {}]   ;;  %s1439_s1 = inlined_call_operand.vmem [shape: s32[4], index: 1, kind: input, shape index: {}]  }
   0x1   :  { %1452 = sst [smem:[#allocation40_spill]] %s1435_s2  ;;  %s10_s20 = sshll.u32 %s1434_s0, 4  ;;  %s11_s20 = int_to_ptr.vmem [resolvable:$true] %s10_s20 }
   0x2   :  { %s14_s23 = sshll.u32 %s1439_s1, 4  ;;  %s708_s24 = scalar_lea.vmem %s11_s20, 16  ;;  %s15_s23 = int_to_ptr.vmem [resolvable:$true] %s14_s23 }
   0x3   :  { %p709_p0 = scmp.ne.s32.totalorder %s11_s20, %s708_s24  ;;  %p713_p1 = scmp.lt.s32.totalorder %s11_s20, %s11_s20 }
   0x4   :  { %p714_p2 = scmp.lt.s32.totalorder %s708_s24, %s708_s24 }
   0x6   :  { %p715_p3 = por %p714_p2, %p713_p1 }
   0x8   :  { %p716_p4 = pnand %p715_p3, %p709_p0 }
   0xa   :  { %719 = shalt.err (!%p716_p4)  }
   0xb   :  { %s1036_s25 = smov [#allocation4]   ;;  %s720_s26 = scalar_lea.vmem %s15_s23, 16 }
   0xc   :  { %13 = dma.vmem_to_smem %s11_s20, 16, %s1036_s25, [#allocation3] }
   0xd   :  { %p721_p5 = scmp.ne.s32.totalorder %s15_s23, %s720_s26  ;;  %p725_p6 = scmp.lt.s32.totalorder %s15_s23, %s15_s23 }
   0xe   :  { %p726_p7 = scmp.lt.s32.totalorder %s720_s26, %s720_s26 }
  0x10   :  { %p727_p8 = por %p726_p7, %p725_p6 }
  0x12   :  { %p728_p9 = pnand %p727_p8, %p721_p5 }
  0x14   :  { %731 = shalt.err (!%p728_p9)  }
  0x15   :  { %s1037_s0 = smov [#allocation5]  }
  0x16   :  { %17 = dma.vmem_to_smem %s15_s23, 16, %s1037_s0, [#allocation3] }
  0x17   :  { %982 = dma.done.wait [#allocation3], 32 }
  0x18   :  { %983 = vsyncadd [#allocation3], 4294967264 }
  0x19   :  { %19 = sfence }
  0x1a   :  { %20 = vsyncpa [#allocation7], 0 }
  0x1b   :  { %22 = vsyncpa [#allocation7 + $0x1], 0  ;;  %s1078_s1 = smov 0   ;;  %s1080_s27 = smov 0  }
  0x1c   :  { %s1082_s28 = smov 0   ;;  %s1084_s29 = smov 0  }
  0x1d LB: > { %1453 = sst [smem:[#allocation36_spill]] %s1030_s28  ;;  %s1099_s30 = sadd.s32 4294967295, %s1034_s29   ;;  %s1034_s29 = sphi %s1084_s29, %s1472_s29   ;;  %s1030_s28 = sphi %s1082_s28, %s1474_s28   ;;  %s1026_s27 = sphi %s1080_s27, %s1476_s27   ;;  %s1022_s1 = sphi %s1078_s1, %s1475_s1  }
  0x1e   : > { %s569_s6 = sadd.s32 4294967294, %s1034_s29   ;;  %s1103_s7 = sadd.s32 1, %s1034_s29  }
  0x1f   : > { %1454 = sst [smem:[#allocation37_spill]] %s1103_s7  ;;  %s82_s8 = sadd.s32 1, %s1030_s28 }
  0x20   : > { %s79_s9 = ssub.s32 %s1034_s29, %s1103_s7  ;;  %p92_p10 = scmp.ne.s32.totalorder %s1030_s28, %s1026_s27 }
  0x21   : > { %p80_p11 = scmp.eq.s32.totalorder %s79_s9, 0  ;;  %p93_p12 = scmp.eq.s32.totalorder %s1099_s30, 3 }
  0x22   : > { %p98_p13 = scmp.ne.s32.totalorder %s1026_s27, %s1022_s1  ;;  %p99_p0 = scmp.eq.s32.totalorder %s569_s6, 3 }
  0x23   : > { %s1114_s10 = scalar_select %p80_p11, %s1030_s28, %s82_s8  }
  0x24   : > { %p1116_p1 = por %p93_p12, %p92_p10  ;;  %p1120_p2 = por %p99_p0, %p98_p13 }
  0x25   : > { %1455 = sst [smem:[#allocation38_spill]] %s1114_s10  ;;  %p572_p3 = scmp.ge.s32.totalorder %s1034_s29, 1 }
  0x26   : > { %s1457_s12 = scalar_select %p1120_p2, 1, 0 }
  0x27   : > { %p127_p4 = scmp.lt.s32.totalorder %s1034_s29, 5 }
  0x28   : > { %1458 = sst [smem:[#allocation39_spill]] %s1457_s12 }
  0x29   : > { %p128_p5 = pnand %p572_p3, %p127_p4 }
  0x2a   : > { %s1440_s13 = sand.u32 (!%p128_p5), 1, %s1026_s27   ;;  %p148_p6 = scmp.lt.s32.totalorder (!%p128_p5), %s1099_s30, 3 }
  0x2b   : > { %131 = sbr.rel (%p128_p5) target bundleno = 677 (0x2a5), region = 28  ;;  %s573_s14 = sshll.u32 (!%p128_p5), %s1440_s13, 3 }
  0x2c   : > { %s1131_s15 = sshll.u32 (!%p128_p5), %s1099_s30, 3  ;;  %s1137_s18 = scalar_lea.vmem (!%p128_p5), [#allocation6], %s573_s14 }
  0x2d   : > { %s1134_s16 = sld [smem:[#allocation4 + %s1131_s15]] (!%p128_p5)  ;;  %s167_s19 = sshll.u32 (!%p128_p5), %s1137_s18, 4  ;;  %s1143_s19 = int_to_ptr.vmem [resolvable:$true] %s167_s19 }
  0x2e   : > { %s1141_s20 = sld [smem:[#allocation4 + %s1131_s15]] (!%p128_p5)  ;;  %s1441_s25 = sadd.s32 (!%p128_p5), 1, %s1131_s15 }
  0x2f   : > { %s1459_s2 = sld [smem:[#allocation40_spill]] (!%p128_p5)  ;;  %s179_s0 = scalar_lea.vmem (!%p128_p5), %s1137_s18, 1 [#allocation6] }
  0x30   : > { %s149_s17 = scalar_select %p148_p6, %s1099_s30, 3 }
  0x31   : > { %s1153_s26 = sld [smem:[#allocation4 + %s1441_s25]]  ;;  %s187_s8 = sshll.u32 %s179_s0, 4  ;;  %s188_s8 = int_to_ptr.vmem [resolvable:$true] %s187_s8 }
  0x32   : > { %s574_s21 = sshll.u32 %s149_s17, 3  ;;  %s1166_s23 = scalar_lea.hbm %s1436_s3, 1024 }
  0x33   : > { %p653_p7 = scmp.ge.s32.totalorder %s1134_s16, 0  ;;  %s577_s6 = sshll.u32 %s1134_s16, 4 }
  0x34   : > { %s159_s13 = scalar_lea.hbm %s1436_s3, %s577_s6 }
  0x35   : > { %s1148_s24 = scalar_lea.vmem %s1459_s2, %s574_s21  ;;  %s732_s17 = scalar_lea.hbm %s159_s13, 16 }
  0x36   : > { %p733_p8 = scmp.ne.s32.totalorder %s159_s13, %s732_s17  ;;  %p737_p11 = scmp.lt.s32.totalorder %s159_s13, %s1436_s3 }
  0x37   : > { %p738_p12 = scmp.lt.s32.totalorder %s1166_s23, %s732_s17 }
  0x38   : > { %p734_p9 = pnand %p733_p8, %p653_p7 }
  0x39   : > { %p739_p13 = por %p738_p12, %p737_p11 }
  0x3a   : > { %p735_p10 = pneg %p734_p9 }
  0x3c   : > { %p740_p0 = pnand %p739_p13, %p735_p10 }
  0x3e   : > { %743 = shalt.err (!%p740_p0)  }
  0x3f   : > { %s744_s0 = scalar_lea.vmem %s1143_s19, 16  ;;  %s1038_s6 = smov [#allocation6]  }
  0x40   : > { %p745_p3 = scmp.ne.s32.totalorder %s1143_s19, %s744_s0  ;;  %s748_s9 = sshll.u32 %s1038_s6, 4  ;;  %s1176_s9 = int_to_ptr.vmem [resolvable:$false] %s748_s9 }
  0x41   : > { %s1179_s2 = scalar_lea.vmem %s1176_s9, 256  ;;  %p1442_p6 = scmp.lt.s32.totalorder %s1143_s19, %s1176_s9 }
  0x42   : > { %p746_p4 = pnand %p745_p3, %p653_p7  ;;  %p752_p8 = scmp.lt.s32.totalorder %s1179_s2, %s744_s0 }
  0x44   : > { %p747_p5 = pneg %p746_p4  ;;  %p753_p9 = por %p752_p8, %p1442_p6 }
  0x46   : > { %p754_p10 = pnand %p753_p9, %p747_p5 }
  0x48   : > { %757 = shalt.err (!%p754_p10)  }
  0x49   : > { %616 = dma.hbm_to_vmem [thread:$0]  (%p653_p7), %s159_s13, 16, %s1143_s19, [#allocation2] }
  0x4a   : > { %p654_p12 = scmp.ge.s32.totalorder %s1153_s26, 0  ;;  %s579_s25 = sshll.u32 %s1153_s26, 4 }
  0x4b   : > { %s1443_s14 = sadd.s32 2, %s1131_s15  ;;  %s178_s21 = scalar_lea.hbm %s1436_s3, %s579_s25 }
  0x4c   : > { %s1199_s16 = sld [smem:[#allocation4 + %s1443_s14]]  ;;  %s758_s0 = scalar_lea.hbm %s178_s21, 16 }
  0x4d   : > { %p759_p13 = scmp.ne.s32.totalorder %s178_s21, %s758_s0  ;;  %p763_p7 = scmp.lt.s32.totalorder %s178_s21, %s1436_s3 }
  0x4e   : > { %p764_p4 = scmp.lt.s32.totalorder %s1166_s23, %s758_s0 }
  0x4f   : > { %p760_p0 = pnand %p759_p13, %p654_p12 }
  0x50   : > { %p765_p5 = por %p764_p4, %p763_p7 }
  0x51   : > { %p761_p3 = pneg %p760_p0 }
  0x53   : > { %p766_p8 = pnand %p765_p5, %p761_p3 }
  0x55   : > { %769 = shalt.err (!%p766_p8)  }
  0x56   : > { %s770_s13 = scalar_lea.vmem %s188_s8, 16  ;;  %p777_p11 = scmp.lt.s32.totalorder %s188_s8, %s1176_s9 }
  0x57   : > { %p771_p9 = scmp.ne.s32.totalorder %s188_s8, %s770_s13  ;;  %p778_p2 = scmp.lt.s32.totalorder %s1179_s2, %s770_s13 }
  0x59   : > { %p772_p10 = pnand %p771_p9, %p654_p12  ;;  %p779_p13 = por %p778_p2, %p777_p11 }
  0x5b   : > { %p773_p6 = pneg %p772_p10 }
  0x5d   : > { %p780_p0 = pnand %p779_p13, %p773_p6 }
  0x5f   : > { %783 = shalt.err (!%p780_p0)  }
  0x60   : > { %618 = dma.hbm_to_vmem [thread:$0]  (%p654_p12), %s178_s21, 16, %s188_s8, [#allocation2] }
  0x61   : > { %s199_s10 = scalar_lea.vmem %s1137_s18, 2 [#allocation6]  ;;  %s1445_s25 = sadd.s32 3, %s1131_s15 }
  0x62   : > { %s207_s17 = sshll.u32 %s199_s10, 4  ;;  %s1217_s22 = sld [smem:[#allocation4 + %s1445_s25]]  ;;  %s208_s17 = int_to_ptr.vmem [resolvable:$true] %s207_s17 }
  0x63   : > { %s219_s0 = scalar_lea.vmem %s1137_s18, 3 [#allocation6]  ;;  %s1448_s6 = sadd.s32 4, %s1131_s15 }
  0x64   : > { %s227_s26 = sshll.u32 %s219_s0, 4  ;;  %p655_p2 = scmp.ge.s32.totalorder %s1199_s16, 0  ;;  %s1223_s26 = int_to_ptr.vmem [resolvable:$true] %s227_s26 }
  0x65   : > { %s581_s13 = sshll.u32 %s1199_s16, 4  ;;  %s1230_s21 = sld [smem:[#allocation4 + %s1448_s6]] }
  0x66   : > { %s198_s8 = scalar_lea.hbm %s1436_s3, %s581_s13 }
  0x67   : > { %s784_s10 = scalar_lea.hbm %s198_s8, 16  ;;  %p789_p3 = scmp.lt.s32.totalorder %s198_s8, %s1436_s3 }
  0x68   : > { %p785_p6 = scmp.ne.s32.totalorder %s198_s8, %s784_s10  ;;  %p790_p7 = scmp.lt.s32.totalorder %s1166_s23, %s784_s10 }
  0x6a   : > { %p786_p11 = pnand %p785_p6, %p655_p2  ;;  %p791_p4 = por %p790_p7, %p789_p3 }
  0x6c   : > { %p787_p12 = pneg %p786_p11 }
  0x6e   : > { %p792_p5 = pnand %p791_p4, %p787_p12 }
  0x70   : > { %795 = shalt.err (!%p792_p5)  }
  0x71   : > { %s796_s0 = scalar_lea.vmem %s208_s17, 16  ;;  %p803_p13 = scmp.lt.s32.totalorder %s208_s17, %s1176_s9 }
  0x72   : > { %p797_p8 = scmp.ne.s32.totalorder %s208_s17, %s796_s0  ;;  %p804_p0 = scmp.lt.s32.totalorder %s1179_s2, %s796_s0 }
  0x74   : > { %p798_p9 = pnand %p797_p8, %p655_p2  ;;  %p805_p6 = por %p804_p0, %p803_p13 }
  0x76   : > { %p799_p10 = pneg %p798_p9 }
  0x78   : > { %p806_p11 = pnand %p805_p6, %p799_p10 }
  0x7a   : > { %809 = shalt.err (!%p806_p11)  }
  0x7b   : > { %620 = dma.hbm_to_vmem [thread:$0]  (%p655_p2), %s198_s8, 16, %s208_s17, [#allocation2] }
  0x7c   : > { %p656_p12 = scmp.ge.s32.totalorder %s1217_s22, 0  ;;  %s583_s28 = sshll.u32 %s1217_s22, 4 }
  0x7d   : > { %s239_s7 = scalar_lea.vmem %s1137_s18, 4 [#allocation6]  ;;  %s218_s13 = scalar_lea.hbm %s1436_s3, %s583_s28 }
  0x7e   : > { %s247_s10 = sshll.u32 %s239_s7, 4  ;;  %s810_s0 = scalar_lea.hbm %s218_s13, 16  ;;  %s248_s10 = int_to_ptr.vmem [resolvable:$true] %s247_s10 }
  0x7f   : > { %p811_p3 = scmp.ne.s32.totalorder %s218_s13, %s810_s0  ;;  %p815_p5 = scmp.lt.s32.totalorder %s218_s13, %s1436_s3 }
  0x80   : > { %p816_p8 = scmp.lt.s32.totalorder %s1166_s23, %s810_s0 }
  0x81   : > { %p812_p7 = pnand %p811_p3, %p656_p12 }
  0x82   : > { %p817_p9 = por %p816_p8, %p815_p5 }
  0x83   : > { %p813_p4 = pneg %p812_p7 }
  0x85   : > { %p818_p2 = pnand %p817_p9, %p813_p4 }
  0x87   : > { %821 = shalt.err (!%p818_p2)  }
  0x88   : > { %s822_s17 = scalar_lea.vmem %s1223_s26, 16  ;;  %p829_p6 = scmp.lt.s32.totalorder %s1223_s26, %s1176_s9 }
  0x89   : > { %p823_p10 = scmp.ne.s32.totalorder %s1223_s26, %s822_s17  ;;  %p830_p11 = scmp.lt.s32.totalorder %s1179_s2, %s822_s17 }
  0x8b   : > { %p824_p13 = pnand %p823_p10, %p656_p12  ;;  %p831_p3 = por %p830_p11, %p829_p6 }
  0x8d   : > { %p825_p0 = pneg %p824_p13 }
  0x8f   : > { %p832_p7 = pnand %p831_p3, %p825_p0 }
  0x91   : > { %835 = shalt.err (!%p832_p7)  }
  0x92   : > { %622 = dma.hbm_to_vmem [thread:$0]  (%p656_p12), %s218_s13, 16, %s1223_s26, [#allocation2] }
  0x93   : > { %p657_p4 = scmp.ge.s32.totalorder %s1230_s21, 0  ;;  %s585_s6 = sshll.u32 %s1230_s21, 4 }
  0x94   : > { %s238_s7 = scalar_lea.hbm %s1436_s3, %s585_s6  ;;  %s1449_s14 = sadd.s32 5, %s1131_s15 }
  0x95   : > { %s836_s25 = scalar_lea.hbm %s238_s7, 16  ;;  %p841_p2 = scmp.lt.s32.totalorder %s238_s7, %s1436_s3 }
  0x96   : > { %p837_p5 = scmp.ne.s32.totalorder %s238_s7, %s836_s25  ;;  %p842_p10 = scmp.lt.s32.totalorder %s1166_s23, %s836_s25 }
  0x98   : > { %p838_p8 = pnand %p837_p5, %p657_p4  ;;  %p843_p13 = por %p842_p10, %p841_p2 }
  0x9a   : > { %p839_p9 = pneg %p838_p8 }
  0x9c   : > { %p844_p12 = pnand %p843_p13, %p839_p9 }
  0x9e   : > { %847 = shalt.err (!%p844_p12)  }
  0x9f   : > { %s848_s26 = scalar_lea.vmem %s248_s10, 16  ;;  %p855_p3 = scmp.lt.s32.totalorder %s248_s10, %s1176_s9 }
  0xa0   : > { %p849_p0 = scmp.ne.s32.totalorder %s248_s10, %s848_s26  ;;  %p856_p7 = scmp.lt.s32.totalorder %s1179_s2, %s848_s26 }
  0xa2   : > { %p850_p6 = pnand %p849_p0, %p657_p4  ;;  %p857_p5 = por %p856_p7, %p855_p3 }
  0xa4   : > { %p851_p11 = pneg %p850_p6 }
  0xa6   : > { %p858_p8 = pnand %p857_p5, %p851_p11 }
  0xa8   : > { %861 = shalt.err (!%p858_p8)  }
  0xa9   : > { %624 = dma.hbm_to_vmem [thread:$0]  (%p657_p4), %s238_s7, 16, %s248_s10, [#allocation2] }
  0xaa   : > { %s1286_s13 = sld [smem:[#allocation4 + %s1449_s14]]  ;;  %s259_s16 = scalar_lea.vmem %s1137_s18, 5 [#allocation6] }
  0xab   : > { %s267_s17 = sshll.u32 %s259_s16, 4  ;;  %s1450_s6 = sadd.s32 6, %s1131_s15  ;;  %s1290_s17 = int_to_ptr.vmem [resolvable:$true] %s267_s17 }
  0xac   : > { %s1294_s21 = sld [smem:[#allocation4 + %s1450_s6]]  ;;  %s279_s8 = scalar_lea.vmem %s1137_s18, 6 [#allocation6] }
  0xad   : > { %s291_s28 = sadd.s32 7, %s1131_s15  ;;  %s287_s25 = sshll.u32 %s279_s8, 4  ;;  %s1302_s25 = int_to_ptr.vmem [resolvable:$true] %s287_s25 }
  0xae   : > { %s1300_s10 = sld [smem:[#allocation4 + %s291_s28]]  ;;  %s299_s7 = scalar_lea.vmem %s1137_s18, 7 [#allocation6] }
  0xaf   : > { %s1307_s0 = sshll.u32 %s299_s7, 4  ;;  %s308_s0 = int_to_ptr.vmem [resolvable:$true] %s1307_s0 }
  0xb0   : > { %p658_p4 = scmp.ge.s32.totalorder %s1286_s13, 0  ;;  %s587_s22 = sshll.u32 %s1286_s13, 4 }
  0xb1   : > { %s258_s14 = scalar_lea.hbm %s1436_s3, %s587_s22 }
  0xb2   : > { %s862_s6 = scalar_lea.hbm %s258_s14, 16  ;;  %p867_p13 = scmp.lt.s32.totalorder %s258_s14, %s1436_s3 }
  0xb3   : > { %p863_p9 = scmp.ne.s32.totalorder %s258_s14, %s862_s6  ;;  %p868_p12 = scmp.lt.s32.totalorder %s1166_s23, %s862_s6 }
  0xb5   : > { %p864_p2 = pnand %p863_p9, %p658_p4  ;;  %p869_p0 = por %p868_p12, %p867_p13 }
  0xb7   : > { %p865_p10 = pneg %p864_p2 }
  0xb9   : > { %p870_p6 = pnand %p869_p0, %p865_p10 }
  0xbb   : > { %873 = shalt.err (!%p870_p6)  }
  0xbc   : > { %s874_s7 = scalar_lea.vmem %s1290_s17, 16  ;;  %p881_p5 = scmp.lt.s32.totalorder %s1290_s17, %s1176_s9 }
  0xbd   : > { %p875_p11 = scmp.ne.s32.totalorder %s1290_s17, %s874_s7  ;;  %p882_p8 = scmp.lt.s32.totalorder %s1179_s2, %s874_s7 }
  0xbf   : > { %p876_p3 = pnand %p875_p11, %p658_p4  ;;  %p883_p9 = por %p882_p8, %p881_p5 }
  0xc1   : > { %p877_p7 = pneg %p876_p3 }
  0xc3   : > { %p884_p2 = pnand %p883_p9, %p877_p7 }
  0xc5   : > { %887 = shalt.err (!%p884_p2)  }
  0xc6   : > { %626 = dma.hbm_to_vmem [thread:$0]  (%p658_p4), %s258_s14, 16, %s1290_s17, [#allocation2] }
  0xc7   : > { %p659_p10 = scmp.ge.s32.totalorder %s1294_s21, 0  ;;  %s589_s12 = sshll.u32 %s1294_s21, 4 }
  0xc8   : > { %s278_s26 = scalar_lea.hbm %s1436_s3, %s589_s12 }
  0xc9   : > { %s888_s16 = scalar_lea.hbm %s278_s26, 16  ;;  %p893_p6 = scmp.lt.s32.totalorder %s278_s26, %s1436_s3 }
  0xca   : > { %p889_p13 = scmp.ne.s32.totalorder %s278_s26, %s888_s16  ;;  %p894_p11 = scmp.lt.s32.totalorder %s1166_s23, %s888_s16 }
  0xcc   : > { %p890_p12 = pnand %p889_p13, %p659_p10  ;;  %p895_p3 = por %p894_p11, %p893_p6 }
  0xce   : > { %p891_p0 = pneg %p890_p12 }
  0xd0   : > { %p896_p7 = pnand %p895_p3, %p891_p0 }
  0xd2   : > { %899 = shalt.err (!%p896_p7)  }
  0xd3   : > { %s900_s14 = scalar_lea.vmem %s1302_s25, 16  ;;  %p907_p9 = scmp.lt.s32.totalorder %s1302_s25, %s1176_s9 }
  0xd4   : > { %p901_p4 = scmp.ne.s32.totalorder %s1302_s25, %s900_s14  ;;  %p908_p2 = scmp.lt.s32.totalorder %s1179_s2, %s900_s14 }
  0xd6   : > { %p902_p5 = pnand %p901_p4, %p659_p10  ;;  %p909_p13 = por %p908_p2, %p907_p9 }
  0xd8   : > { %p903_p8 = pneg %p902_p5 }
  0xda   : > { %p910_p12 = pnand %p909_p13, %p903_p8 }
  0xdc   : > { %913 = shalt.err (!%p910_p12)  }
  0xdd   : > { %628 = dma.hbm_to_vmem [thread:$0]  (%p659_p10), %s278_s26, 16, %s1302_s25, [#allocation2] }
  0xde   : > { %p660_p0 = scmp.ge.s32.totalorder %s1300_s10, 0  ;;  %s591_s13 = sshll.u32 %s1300_s10, 4 }
  0xdf   : > { %s298_s6 = scalar_lea.hbm %s1436_s3, %s591_s13 }
  0xe0   : > { %s914_s22 = scalar_lea.hbm %s298_s6, 16  ;;  %p919_p7 = scmp.lt.s32.totalorder %s298_s6, %s1436_s3 }
  0xe1   : > { %p915_p6 = scmp.ne.s32.totalorder %s298_s6, %s914_s22  ;;  %p920_p4 = scmp.lt.s32.totalorder %s1166_s23, %s914_s22 }
  0xe3   : > { %p916_p11 = pnand %p915_p6, %p660_p0  ;;  %p921_p5 = por %p920_p4, %p919_p7 }
  0xe5   : > { %p917_p3 = pneg %p916_p11 }
  0xe7   : > { %p922_p8 = pnand %p921_p5, %p917_p3 }
  0xe9   : > { %925 = shalt.err (!%p922_p8)  }
  0xea   : > { %s926_s25 = scalar_lea.vmem %s308_s0, 16  ;;  %p933_p13 = scmp.lt.s32.totalorder %s308_s0, %s1176_s9 }
  0xeb   : > { %p927_p10 = scmp.ne.s32.totalorder %s308_s0, %s926_s25  ;;  %p934_p12 = scmp.lt.s32.totalorder %s1179_s2, %s926_s25 }
  0xed   : > { %p928_p9 = pnand %p927_p10, %p660_p0  ;;  %p935_p6 = por %p934_p12, %p933_p13 }
  0xef   : > { %p929_p2 = pneg %p928_p9 }
  0xf1   : > { %p936_p11 = pnand %p935_p6, %p929_p2 }
  0xf3   : > { %939 = shalt.err (!%p936_p11)  }
  0xf4   : > { %630 = dma.hbm_to_vmem [thread:$0]  (%p660_p0), %s298_s6, 16, %s308_s0, [#allocation2] }
  0xf5   : > { %p1460_p7 = scmp.ge.s32.totalorder %s1141_s20, 0 }
  0xf7   : > { %985 = dma.done.wait (%p1460_p7), [#allocation2], 16  ;;  %p1461_p3 = pmov %p1460_p7 }
  0xf8   : > { %s1462_s23 = sadd.s32 1, %s1131_s15 }
  0xf9   : > { %987 = vsyncadd (%p1461_p3), [#allocation2], 4294967280  ;;  %s319_s26 = sld [smem:[#allocation4 + %s1462_s23]] }
  0xff   : > { %p662_p4 = scmp.ge.s32.totalorder %s319_s26, 0 }
 0x101   : > { %989 = dma.done.wait (%p662_p4), [#allocation2], 16 }
 0x102   : > { %991 = vsyncadd (%p662_p4), [#allocation2], 4294967280  ;;  %s1463_s8 = sadd.s32 2, %s1131_s15 }
 0x103   : > { %s327_s7 = sld [smem:[#allocation4 + %s1463_s8]] }
 0x109   : > { %p663_p5 = scmp.ge.s32.totalorder %s327_s7, 0 }
 0x10b   : > { %993 = dma.done.wait (%p663_p5), [#allocation2], 16 }
 0x10c   : > { %995 = vsyncadd (%p663_p5), [#allocation2], 4294967280  ;;  %s1464_s10 = sadd.s32 3, %s1131_s15 }
 0x10d   : > { %s335_s0 = sld [smem:[#allocation4 + %s1464_s10]] }
 0x113   : > { %p664_p0 = scmp.ge.s32.totalorder %s335_s0, 0 }
 0x115   : > { %997 = dma.done.wait (%p664_p0), [#allocation2], 16 }
 0x116   : > { %999 = vsyncadd (%p664_p0), [#allocation2], 4294967280  ;;  %s1465_s20 = sadd.s32 4, %s1131_s15 }
 0x117   : > { %s343_s14 = sld [smem:[#allocation4 + %s1465_s20]] }
 0x11d   : > { %p665_p8 = scmp.ge.s32.totalorder %s343_s14, 0 }
 0x11f   : > { %1001 = dma.done.wait (%p665_p8), [#allocation2], 16 }
 0x120   : > { %1003 = vsyncadd (%p665_p8), [#allocation2], 4294967280  ;;  %s1466_s13 = sadd.s32 5, %s1131_s15 }
 0x121   : > { %s351_s17 = sld [smem:[#allocation4 + %s1466_s13]] }
 0x127   : > { %p666_p10 = scmp.ge.s32.totalorder %s351_s17, 0 }
 0x129   : > { %1005 = dma.done.wait (%p666_p10), [#allocation2], 16 }
 0x12a   : > { %1007 = vsyncadd (%p666_p10), [#allocation2], 4294967280  ;;  %s1467_s12 = sadd.s32 6, %s1131_s15 }
 0x12b   : > { %s359_s6 = sld [smem:[#allocation4 + %s1467_s12]] }
 0x131   : > { %p667_p9 = scmp.ge.s32.totalorder %s359_s6, 0 }
 0x133   : > { %1009 = dma.done.wait (%p667_p9), [#allocation2], 16 }
 0x134   : > { %1011 = vsyncadd (%p667_p9), [#allocation2], 4294967280  ;;  %s367_s22 = sld [smem:[#allocation4 + %s291_s28]] }
 0x13a   : > { %p668_p2 = scmp.ge.s32.totalorder %s367_s22, 0 }
 0x13c   : > { %1013 = dma.done.wait (%p668_p2), [#allocation2], 16 }
 0x13d   : > { %1015 = vsyncadd (%p668_p2), [#allocation2], 4294967280  ;;  %s375_s21 = sld [smem:[#allocation5 + %s1099_s30]] }
 0x143   : > { %p600_p13 = scmp.le.s32.totalorder %s375_s21, 0 }
 0x145   : > { %379 = sbr.rel (%p600_p13) target bundleno = 654 (0x28e), region = 128 }
 0x14a   : > { %v380_v0 = vld [vmem:[%s1148_s24] sm:$0xff]  ;;  %v1039_v2 = vmov 0   ;;  %v1040_v3 = vmov 0.0   ;;  %vm1041_vm1 = vmmov 0   ;;  %v383_v6 = vlaneseq }
 0x14b   : > { %v391_v1 = vld [vmem:[%s1437_s4] sm:$0xff]  ;;  %707 = vset.pattern.permute.xlu0 %v1039_v2  ;;  %vm381_vm0 = vcmp.ge.s32.totalorder %v380_v0, 0  ;;  %610 = vmatprep.subr.mxu0 %v1040_v3  ;;  %vm392_vm2 = vcmask 64512  }
 0x14c   : > { %v382_v4 = vsel %vm381_vm0, %v380_v0, 0  ;;  %611 = vmatpush3.msra.mxu0 %v391_v1  ;;  %612 = vmatprep.mubr.msk.f32.mxu0 %vm1041_vm1, %v1040_v3  ;;  %v467_v5 = vsel %vm381_vm0, 1, %v1039_v2  ;;  %v384_v7 = vand.u32 127, %v383_v6  ;;  %v466_v11 = vld [vmem:[%s1137_s18] sm:$0xff] }
 0x14d   : > { %386 = vperm.xlu0 %707, %v382_v4  }
 0x151   : > { %469 = vperm.xlu0 %707, %v467_v5  }
 0x1c8   : > { %v387_v8 = vpop.permute.xlu0 %386 }
 0x1c9   : > { %vm388_vm3 = vcmp.eq.s32.totalorder %v387_v8, %v384_v7 }
 0x1ca   : > { %v601_v9 = vsel %vm388_vm3, 1.0, %v1040_v3 }
 0x1cb   : > { %613 = vmatmul.mubr.msk.f32.vlgmr.msra.gmra.mxu0 %vm392_vm2, %v601_v9 }
 0x1cc   : > { %v470_v10 = vpop.permute.xlu0 %469 }
 0x1cd   : > { %vm471_vm4 = vcmp.eq.s32.totalorder %v470_v10, 1 }
 0x28b   : > { %v462_v12 = vpop.f32.mrf.mxu0 }
 0x28c   : > { %v472_v13 = vsel %vm471_vm4, %v462_v12, %v466_v11 }
 0x28d   : > { %473 = vst [vmem:[%s1137_s18] sm:$0xff] %v472_v13  ;;  %v614_v14 = vpop.f32.mrf.mxu0 }
 0x28e PF: > { %s604_s15 = sshll.u32 %s1099_s30, 7  ;;  %s1468_s26 = sand.u32 1, %s1026_s27  }
 0x28f   : > { %s486_s23 = scalar_lea.hbm %s1438_s5, %s604_s15  ;;  %s475_s8 = scalar_lea.sflag [#allocation7], %s1468_s26 }
 0x290   : > { %s940_s7 = scalar_lea.vmem %s1143_s19, 128  ;;  %p1469_p3 = scmp.lt.s32.totalorder %s1143_s19, %s1176_s9 }
 0x291   : > { %p941_p12 = scmp.ne.s32.totalorder %s1143_s19, %s940_s7  ;;  %p948_p7 = scmp.lt.s32.totalorder %s1179_s2, %s940_s7 }
 0x293   : > { %p942_p6 = pnand %p941_p12, %p1116_p1  ;;  %p949_p4 = por %p948_p7, %p1469_p3 }
 0x295   : > { %p943_p11 = pneg %p942_p6 }
 0x297   : > { %p950_p5 = pnand %p949_p4, %p943_p11 }
 0x299   : > { %953 = shalt.err (!%p950_p5)
}
 0x29a   : > { %s954_s18 = scalar_lea.hbm %s486_s23, 128  ;;  %s958_s0 = scalar_lea.hbm %s1438_s5, 512 }
 0x29b   : > { %p955_p0 = scmp.ne.s32.totalorder %s486_s23, %s954_s18  ;;  %p959_p9 = scmp.lt.s32.totalorder %s486_s23, %s1438_s5 }
 0x29c   : > { %p960_p2 = scmp.lt.s32.totalorder %s958_s0, %s954_s18 }
 0x29d   : > { %p956_p8 = pnand %p955_p0, %p1116_p1 }
 0x29e   : > { %p961_p13 = por %p960_p2, %p959_p9 }
 0x29f   : > { %p957_p10 = pneg %p956_p8 }
 0x2a1   : > { %p962_p12 = pnand %p961_p13, %p957_p10 }
 0x2a3   : > { %965 = shalt.err (!%p962_p12)
}
 0x2a4   : > { %647 = dma.vmem_to_hbm [thread:$0]  (%p1116_p1), %s1143_s19, 128, %s486_s23, %s475_s8  }
 0x2a5 PF: > { %s1470_s9 = sld [smem:[#allocation39_spill]]  ;;  %p669_p6 = scmp.ge.s32.totalorder %s1034_s29, 2 }
 0x2a6   : > { %s500_s2 = sand.u32 1, %s1022_s1  }
 0x2a7   : > { %s501_s13 = scalar_lea.sflag [#allocation7], %s500_s2 }
 0x2ab   : > { %p1471_p11 = scmp.ne.s32.totalorder %s1470_s9, 0 }
 0x2ad   : > { %p650_p7 = pnand %p669_p6, %p1471_p11 }
 0x2af   : > { %p651_p3 = pneg %p650_p7 }
 0x2b1   : > { %1017 = dma.done.wait (%p651_p3), %s501_s13, 128  }
 0x2b2   : > { %1019 = vsyncadd (%p651_p3), %s501_s13, 4294967168  ;;  %s1472_s29 = sld [smem:[#allocation37_spill]]  ;;  %s1475_s1 = smov %s1026_s27 }
 0x2b3   : > { %s1473_s17 = sld [smem:[#allocation36_spill]] }
 0x2b4   : > { %s1474_s28 = sld [smem:[#allocation38_spill]] }
 0x2b8   : > { %p25_p4 = scmp.ge.s32.totalorder %s1472_s29, 6  }
 0x2b9   : > { %s1476_s27 = smov %s1473_s17 }
 0x2ba   :  { %27 = sbr.rel (!%p25_p4) target bundleno = 29 (0x1d), region = 178 }
 0x2bf   :  { %506 = vsyncpa [#allocation7], 1 }
 0x2c0   :  { %508 = vsyncpa [#allocation7 + $0x1], 1 }
 0x2c1   :  { %509 = vsyncmov [#allocation2] }
 0x2c4   :  { %s510_s11 = vpop.sfrf %509 }
 0x2c5   :  { %p607_p1 = scmp.ne.s32.totalorder %s510_s11, 0 }
 0x2c7   :  { %514 = shalt.err (%p607_p1)  }

</bundles_post_ra>
